<compile_context>
chip_gen: v7x
topology: tpu7x:2x2x1
jax: 0.10.0
libtpu: 0.0.40
codegen_flags: <defaults>
</compile_context>

<pallas_src>
import functools

import jax
import jax.numpy as jnp
from jax.experimental import pallas as pl
from jax.experimental.pallas import tpu as pltpu

K_LANES = 128   # fused (w_pad, c) contraction width, padded to one full lane tile
TILE_B = 8      # images stacked along sublanes per grid step -> M = TILE_B*H = 128


def _fused_net_kernel(x_ref, slab_ref, out_ref, *, H, tile_B):
    """Conv3x3(pad=1)+bias+ReLU -> GAP -> Linear for tile_B images at once.

    x_ref   : (3, tile_B*H, 128) bf16  di-shifted row windows, images stacked on M
    slab_ref: (528, 128)         bf16  packed parameters (see pack_model_fs_params)
    out_ref : (tile_B, 128)      f32   per-image logits, lane-dense
    """
    K = K_LANES
    M = tile_B * H
    b1_off = 3 * K            # 384
    w2_off = b1_off + 8       # 392
    b2_off = w2_off + K       # 520

    # 3x3 conv, padding=1, as three full-tile (M,128)x(128,128) MXU matmuls:
    # dj (width) taps + channel contraction live in the block-structured weights;
    # the di (height) tap selects one of the three pre-shifted row windows.
    acc = jnp.zeros((M, K), jnp.float32)
    for di in range(3):                               # static, unrolled
        acc = acc + jnp.dot(x_ref[di], slab_ref[di * K:(di + 1) * K, :],
                            preferred_element_type=jnp.float32)

    # conv bias + ReLU (bias pre-tiled per (j, cout) lane)
    h = jnp.maximum(acc + slab_ref[b1_off:b1_off + 1, :].astype(jnp.float32), 0.0)

    # Global average pool over rows of each image via a 0/1 segment matmul
    # (stays on the MXU; no cross-sublane reduce).  1/(H*W) is folded into w2.
    r = jax.lax.broadcasted_iota(jnp.int32, (tile_B, M), 1)
    b = jax.lax.broadcasted_iota(jnp.int32, (tile_B, M), 0)
    seg = ((r >= b * H) & (r < (b + 1) * H)).astype(jnp.bfloat16)     # (tile_B, M)
    pooled = jnp.dot(seg, h.astype(jnp.bfloat16),
                     preferred_element_type=jnp.float32)              # (tile_B, K)

    # Classifier: contract (j, cout) lanes against GAP-folded weights, add bias.
    logits = jnp.dot(pooled.astype(jnp.bfloat16), slab_ref[w2_off:w2_off + K, :],
                     preferred_element_type=jnp.float32)              # (tile_B, 128)
    out_ref[...] = logits + slab_ref[b2_off:b2_off + 1, :].astype(jnp.float32)


def pack_model_fs_params(params, H, W):
    """Pack (conv_w, conv_b, fc_w, fc_b) into one bf16 (3*128 + 8 + 128 + 8, 128)
    slab consumed by the kernel.  Done once per set of weights."""
    w1, b1, w2, b2 = params                  # w1: (Cout, Cin, 3, 3) PyTorch layout
    Cout, C = w1.shape[0], w1.shape[1]
    NC = w2.shape[1]
    K = K_LANES
    assert K % C == 0
    Wp = K // C                              # padded width fused into lanes (32)
    N = W * Cout
    assert N == 128, "demo net is sized so W*Cout == 128 (one full lane tile)"
    assert NC <= 128 and W + 2 <= Wp

    # conv weight -> (di, dj, C, Cout), matching xp[i+di, j+dj, c] tap order.
    wt = jnp.transpose(w1.astype(jnp.float32), (2, 3, 1, 0))
    # shift[dj, j_pad, j_out] = 1 iff j_pad == j_out + dj   (padding=1 taps)
    shift = jnp.stack([jnp.eye(Wp, W, k=-dj, dtype=jnp.float32) for dj in range(3)])
    # wconv[di, j_pad*C + c, j_out*Cout + co] = sum_dj shift[dj] * wt[di, dj, c, co]
    wconv = jnp.einsum("dab,edcq->eacbq", shift, wt).reshape(3 * K, N)   # (384, 128)

    b1_row = jnp.tile(b1.astype(jnp.float32), W).reshape(1, N)        # per (j, co) lane
    w2_big = jnp.tile(w2.astype(jnp.float32) / (H * W), (W, 1))       # GAP folded in
    w2_big = jnp.pad(w2_big, ((0, 0), (0, 128 - NC)))                 # (128, 128)
    b2_row = jnp.pad(b2.astype(jnp.float32), (0, 128 - NC)).reshape(1, 128)

    pad8 = lambda a: jnp.pad(a, ((0, 8 - a.shape[0]), (0, 0)))        # keep 8-aligned
    slab = jnp.concatenate([wconv, pad8(b1_row), w2_big, pad8(b2_row)], axis=0)
    return slab.astype(jnp.bfloat16)    # bf16 operands: single-pass MXU, half the DMA


def model_fs_forward(x_nchw, slab, *, num_classes, tile_b=TILE_B):
    """Model_FS.forward: returns only the logits (outputs) of basic_net(inputs)."""
    B, C, H, W = x_nchw.shape
    K = K_LANES
    assert K % C == 0 and W + 2 <= K // C and (tile_b * H) % 8 == 0
    B_pad = ((B + tile_b - 1) // tile_b) * tile_b
    slab_rows = slab.shape[0]

    # Cheap input prep (fuses into a transpose + one elementwise fusion; no im2col
    # blowup): NCHW -> NHWC bf16, pad batch to B_pad, spatial pad=1 (width padded
    # further so W_pad*C == 128 lanes), fuse (w, c) into lanes, and pre-build the
    # three 8-aligned di row windows with all images stacked along sublanes.
    x = jnp.transpose(x_nchw, (0, 2, 3, 1)).astype(jnp.bfloat16)
    xp = jnp.pad(x, ((0, B_pad - B), (1, 1), (1, K // C - W - 1), (0, 0)))
    xp = xp.reshape(B_pad, H + 2, K)
    xw = jnp.stack([xp[:, di:di + H] for di in range(3)], axis=0)     # (3,B_pad,H,K)
    xw = xw.reshape(3, B_pad * H, K)

    kernel = functools.partial(_fused_net_kernel, H=H, tile_B=tile_b)

    out = pl.pallas_call(
        kernel,
        out_shape=jax.ShapeDtypeStruct((B_pad, 128), jnp.float32),
        grid=(B_pad // tile_b,),
        in_specs=[
            pl.BlockSpec((3, tile_b * H, K), lambda g: (0, g, 0)),
            pl.BlockSpec((slab_rows, 128), lambda g: (0, 0)),   # constant param slab
        ],
        out_specs=pl.BlockSpec((tile_b, 128), lambda g: (g, 0)),
        compiler_params=pltpu.CompilerParams(
            dimension_semantics=("parallel",)),
    )(xw, slab)
    return out[:B, :num_classes]


def reference_forward(x_nchw, params):
    """Pure-JAX f32/HIGHEST reference of basic_net (independent conv path)."""
    w1, b1, w2, b2 = params
    y = jax.lax.conv_general_dilated(
        x_nchw.astype(jnp.float32), w1.astype(jnp.float32),
        window_strides=(1, 1), padding=((1, 1), (1, 1)),
        dimension_numbers=("NCHW", "OIHW", "NCHW"),
        precision=jax.lax.Precision.HIGHEST)
    y = jnp.maximum(y + b1.reshape(1, -1, 1, 1), 0.0)
    pooled = jnp.mean(y, axis=(2, 3))                                 # (B, Cout)
    return jnp.dot(pooled, w2.astype(jnp.float32),
                   precision=jax.lax.Precision.HIGHEST) + b2.astype(jnp.float32)


if __name__ == "__main__":
    B, C, H, W = 2, 4, 16, 16
    Cout, num_classes = 8, 10

    key = jax.random.PRNGKey(0)
    kx, k1, k2, k3, k4 = jax.random.split(key, 5)
    x = jax.random.normal(kx, (B, C, H, W), dtype=jnp.float32)

    # deterministic parameter init (basic_net is in eval mode; no BN / dropout)
    w1 = jax.random.normal(k1, (Cout, C, 3, 3), dtype=jnp.float32) * 0.1
    b1 = jax.random.normal(k2, (Cout,), dtype=jnp.float32) * 0.01
    w2 = jax.random.normal(k3, (Cout, num_classes), dtype=jnp.float32) * 0.1
    b2 = jax.random.normal(k4, (num_classes,), dtype=jnp.float32) * 0.01
    params = (w1, b1, w2, b2)

    slab = pack_model_fs_params(params, H, W)   # one-time parameter packing
    out = model_fs_forward(x, slab, num_classes=num_classes)
    out = jax.block_until_ready(out)

    ref = reference_forward(x, params)
    assert out.shape == (B, num_classes)
    # bf16 operands (f32 accumulation) vs the f32/HIGHEST reference: observed
    # error is a few 1e-4; 1e-2 keeps a wide margin while still catching bugs.
    assert jnp.allclose(out, ref, atol=1e-2, rtol=1e-2), "mismatch vs reference"

    print("KERNEL_OK")
</pallas_src>

<mosaic_0001>
module attributes {stable_mosaic.version = 11 : i64} {
  func.func @_fused_net_kernel(%arg0: i32, %arg1: memref<3x128x128xbf16, #tpu.memory_space<vmem>>, %arg2: memref<528x128xbf16, #tpu.memory_space<vmem>>, %arg3: memref<8x128xf32, #tpu.memory_space<vmem>>) attributes {dimension_semantics = [#tpu.dimension_semantics<parallel>], iteration_bounds = array<i64: 1>, scalar_prefetch = 0 : i64, scratch_operands = 0 : i64, tpu.core_type = #tpu.core_type<tc>, window_params = [{transform_indices = @transform_0, window_bounds = array<i64: 3, 128, 128>}, {pipeline_mode = #tpu.pipeline_mode<synchronous>, transform_indices = @transform_1, window_bounds = array<i64: 528, 128>}, {transform_indices = @transform_2, window_bounds = array<i64: 8, 128>}]} {
    %cst = arith.constant 0.000000e+00 : f32
    %0 = vector.broadcast %cst : f32 to vector<128x128xf32>
    %c0 = arith.constant 0 : index
    %c0_0 = arith.constant 0 : index
    %c0_1 = arith.constant 0 : index
    %1 = vector.load %arg1[%c0, %c0_0, %c0_1] : memref<3x128x128xbf16, #tpu.memory_space<vmem>>, vector<1x128x128xbf16>
    %2 = vector.shape_cast %1 : vector<1x128x128xbf16> to vector<128x128xbf16>
    %c0_2 = arith.constant 0 : index
    %c0_3 = arith.constant 0 : index
    %3 = vector.load %arg2[%c0_2, %c0_3] : memref<528x128xbf16, #tpu.memory_space<vmem>>, vector<128x128xbf16>
    %cst_4 = arith.constant dense<0.000000e+00> : vector<128x128xf32>
    %4 = tpu.matmul %2, %3, %cst_4 {dimension_numbers = #tpu.dot_dimension_numbers<[1], [0], [0], [1], [0, 0, 1, 1], [], []>} : vector<128x128xbf16>, vector<128x128xbf16>, vector<128x128xf32> -> vector<128x128xf32>
    %5 = arith.addf %0, %4 : vector<128x128xf32>
    %c1 = arith.constant 1 : index
    %c0_5 = arith.constant 0 : index
    %c0_6 = arith.constant 0 : index
    %6 = vector.load %arg1[%c1, %c0_5, %c0_6] : memref<3x128x128xbf16, #tpu.memory_space<vmem>>, vector<1x128x128xbf16>
    %7 = vector.shape_cast %6 : vector<1x128x128xbf16> to vector<128x128xbf16>
    %c128 = arith.constant 128 : index
    %c0_7 = arith.constant 0 : index
    %8 = vector.load %arg2[%c128, %c0_7] : memref<528x128xbf16, #tpu.memory_space<vmem>>, vector<128x128xbf16>
    %cst_8 = arith.constant dense<0.000000e+00> : vector<128x128xf32>
    %9 = tpu.matmul %7, %8, %cst_8 {dimension_numbers = #tpu.dot_dimension_numbers<[1], [0], [0], [1], [0, 0, 1, 1], [], []>} : vector<128x128xbf16>, vector<128x128xbf16>, vector<128x128xf32> -> vector<128x128xf32>
    %10 = arith.addf %5, %9 : vector<128x128xf32>
    %c2 = arith.constant 2 : index
    %c0_9 = arith.constant 0 : index
    %c0_10 = arith.constant 0 : index
    %11 = vector.load %arg1[%c2, %c0_9, %c0_10] : memref<3x128x128xbf16, #tpu.memory_space<vmem>>, vector<1x128x128xbf16>
    %12 = vector.shape_cast %11 : vector<1x128x128xbf16> to vector<128x128xbf16>
    %c256 = arith.constant 256 : index
    %c0_11 = arith.constant 0 : index
    %13 = vector.load %arg2[%c256, %c0_11] : memref<528x128xbf16, #tpu.memory_space<vmem>>, vector<128x128xbf16>
    %cst_12 = arith.constant dense<0.000000e+00> : vector<128x128xf32>
    %14 = tpu.matmul %12, %13, %cst_12 {dimension_numbers = #tpu.dot_dimension_numbers<[1], [0], [0], [1], [0, 0, 1, 1], [], []>} : vector<128x128xbf16>, vector<128x128xbf16>, vector<128x128xf32> -> vector<128x128xf32>
    %15 = arith.addf %10, %14 : vector<128x128xf32>
    %c384 = arith.constant 384 : index
    %c0_13 = arith.constant 0 : index
    %16 = vector.load %arg2[%c384, %c0_13] : memref<528x128xbf16, #tpu.memory_space<vmem>>, vector<1x128xbf16>
    %17 = arith.extf %16 : vector<1x128xbf16> to vector<1x128xf32>
    %18 = vector.broadcast %17 : vector<1x128xf32> to vector<128x128xf32>
    %19 = arith.addf %15, %18 : vector<128x128xf32>
    %cst_14 = arith.constant 0.000000e+00 : f32
    %20 = vector.broadcast %cst_14 : f32 to vector<128x128xf32>
    %21 = arith.maximumf %19, %20 : vector<128x128xf32>
    %22 = tpu.iota {dimensions = array<i32: 1>} : vector<8x128xi32>
    %23 = tpu.iota {dimensions = array<i32: 0>} : vector<8x128xi32>
    %c16_i32 = arith.constant 16 : i32
    %24 = vector.broadcast %c16_i32 : i32 to vector<8x128xi32>
    %25 = arith.muli %23, %24 : vector<8x128xi32>
    %26 = arith.cmpi sge, %22, %25 : vector<8x128xi32>
    %c1_i32 = arith.constant 1 : i32
    %27 = vector.broadcast %c1_i32 : i32 to vector<8x128xi32>
    %28 = arith.addi %23, %27 : vector<8x128xi32>
    %c16_i32_15 = arith.constant 16 : i32
    %29 = vector.broadcast %c16_i32_15 : i32 to vector<8x128xi32>
    %30 = arith.muli %28, %29 : vector<8x128xi32>
    %31 = arith.cmpi slt, %22, %30 : vector<8x128xi32>
    %32 = arith.andi %26, %31 : vector<8x128xi1>
    %33 = arith.extui %32 : vector<8x128xi1> to vector<8x128xi32>
    %34 = arith.sitofp %33 : vector<8x128xi32> to vector<8x128xf32>
    %35 = arith.truncf %34 : vector<8x128xf32> to vector<8x128xbf16>
    %36 = arith.truncf %21 : vector<128x128xf32> to vector<128x128xbf16>
    %cst_16 = arith.constant dense<0.000000e+00> : vector<8x128xf32>
    %37 = tpu.matmul %35, %36, %cst_16 {dimension_numbers = #tpu.dot_dimension_numbers<[1], [0], [0], [1], [0, 0, 1, 1], [], []>} : vector<8x128xbf16>, vector<128x128xbf16>, vector<8x128xf32> -> vector<8x128xf32>
    %38 = arith.truncf %37 : vector<8x128xf32> to vector<8x128xbf16>
    %c392 = arith.constant 392 : index
    %c0_17 = arith.constant 0 : index
    %39 = vector.load %arg2[%c392, %c0_17] : memref<528x128xbf16, #tpu.memory_space<vmem>>, vector<128x128xbf16>
    %cst_18 = arith.constant dense<0.000000e+00> : vector<8x128xf32>
    %40 = tpu.matmul %38, %39, %cst_18 {dimension_numbers = #tpu.dot_dimension_numbers<[1], [0], [0], [1], [0, 0, 1, 1], [], []>} : vector<8x128xbf16>, vector<128x128xbf16>, vector<8x128xf32> -> vector<8x128xf32>
    %c520 = arith.constant 520 : index
    %c0_19 = arith.constant 0 : index
    %41 = vector.load %arg2[%c520, %c0_19] : memref<528x128xbf16, #tpu.memory_space<vmem>>, vector<1x128xbf16>
    %42 = arith.extf %41 : vector<1x128xbf16> to vector<1x128xf32>
    %43 = vector.broadcast %42 : vector<1x128xf32> to vector<8x128xf32>
    %44 = arith.addf %40, %43 : vector<8x128xf32>
    %c0_20 = arith.constant 0 : index
    %c0_21 = arith.constant 0 : index
    %45 = vector.load %arg3[%c0_20, %c0_21] : memref<8x128xf32, #tpu.memory_space<vmem>>, vector<8x128xf32>
    tpu.vector_store %arg3[%c0_20, %c0_21], %44 {strides = array<i32>} : memref<8x128xf32, #tpu.memory_space<vmem>>, vector<8x128xf32>,
    return
  }
  func.func @transform_0(%arg0: i32) -> (i32, i32, i32) {
    %c0_i32 = arith.constant 0 : i32
    %c0_i32_0 = arith.constant 0 : i32
    %c0_i32_1 = arith.constant 0 : i32
    return %c0_i32, %arg0, %c0_i32_0 : i32, i32, i32
  }
  func.func @transform_1(%arg0: i32) -> (i32, i32) {
    %c0_i32 = arith.constant 0 : i32
    %c0_i32_0 = arith.constant 0 : i32
    %c0_i32_1 = arith.constant 0 : i32
    return %c0_i32, %c0_i32_0 : i32, i32
  }
  func.func @transform_2(%arg0: i32) -> (i32, i32) {
    %c0_i32 = arith.constant 0 : i32
    %c0_i32_0 = arith.constant 0 : i32
    return %arg0, %c0_i32 : i32, i32
  }
}

</mosaic_0001>

<bundles_post_ra>
// kernel: tpu_custom_call.1
= control target key start
LH: loop header
LB: loop body
LE: loop exit
PB: predicated region body
PF: predicated region fallthrough
CT: control target
= control target key end

     0   :  { %7 = vsyncpa [#allocation3], 0  ;;  %s1498_s0 = inlined_call_operand.hbm [shape: bf16[3,128,128], index: 0, kind: input, shape index: {}]   ;;  %s1499_s1 = inlined_call_operand.hbm [shape: bf16[528,128], index: 1, kind: input, shape index: {}]   ;;  %s1500_s2 = inlined_call_operand.hbm [shape: f32[8,128], index: 2, kind: output, shape index: {}]  }
   0x1   :  { %8 = vsyncpa [#allocation6], 0 }
   0x2   :  { %9 = vsyncpa [#allocation4], 0  ;;  %s1390_s9 = smov [#allocation2]   ;;  %s1318_s13 = scalar_lea.hbm %s1498_s0, 3072 }
   0x3   :  { %s15_s10 = sshll.u32 %s1390_s9, 4  ;;  %p1319_p0 = scmp.ne.s32.totalorder %s1498_s0, %s1318_s13  ;;  %s16_s10 = int_to_ptr.vmem [resolvable:$true] %s15_s10 }
   0x4   :  { %p1322_p1 = scmp.lt.u32.totalorder %s1318_s13, %s1498_s0 }
   0x6   :  { %p1324_p2 = pnand %p1322_p1, %p1319_p0 }
   0x8   :  { %1327 = shalt.err (!%p1324_p2)
}
   0x9   :  { %s1328_s18 = scalar_lea.vmem %s16_s10, 3072  ;;  %p1333_p4 = scmp.lt.s32.totalorder %s16_s10, %s16_s10 }
   0xa   :  { %p1329_p3 = scmp.ne.s32.totalorder %s16_s10, %s1328_s18  ;;  %p1334_p5 = scmp.lt.s32.totalorder %s1328_s18, %s1328_s18 }
   0xc   :  { %p1335_p6 = por %p1334_p5, %p1333_p4 }
   0xe   :  { %p1336_p7 = pnand %p1335_p6, %p1329_p3 }
  0x10   :  { %1339 = shalt.err (!%p1336_p7)
}
  0x11   :  { %s1391_s19 = smov 64   ;;  %s1392_s20 = smov 4  }
  0x12   :  { %21 = dma.hbm_to_vmem [thread:$0]  %s1498_s0, 3072, %s16_s10, [#allocation3], %s1391_s19, %s1391_s19, %s1392_s20  }
  0x13   :  { %s1393_s23 = smov [#allocation5]   ;;  %s1340_s27 = scalar_lea.hbm %s1499_s1, 4224 }
  0x14   :  { %s27_s24 = sshll.u32 %s1393_s23, 4  ;;  %p1341_p8 = scmp.ne.s32.totalorder %s1499_s1, %s1340_s27  ;;  %s28_s24 = int_to_ptr.vmem [resolvable:$true] %s27_s24 }
  0x15   :  { %p1344_p9 = scmp.lt.u32.totalorder %s1340_s27, %s1499_s1 }
  0x17   :  { %p1346_p10 = pnand %p1344_p9, %p1341_p8 }
  0x19   :  { %1349 = shalt.err (!%p1346_p10)
}
  0x1a   :  { %s1350_s4 = scalar_lea.vmem %s28_s24, 4224  ;;  %p1355_p12 = scmp.lt.s32.totalorder %s28_s24, %s28_s24 }
  0x1b   :  { %p1351_p11 = scmp.ne.s32.totalorder %s28_s24, %s1350_s4  ;;  %p1356_p13 = scmp.lt.s32.totalorder %s1350_s4, %s1350_s4 }
  0x1d   :  { %p1357_p0 = por %p1356_p13, %p1355_p12 }
  0x1f   :  { %p1358_p1 = pnand %p1357_p0, %p1351_p11 }
  0x21   :  { %1361 = shalt.err (!%p1358_p1)
}
  0x22   :  { %33 = dma.hbm_to_vmem [thread:$0]  %s1499_s1, 4224, %s28_s24, [#allocation6], %s1391_s19, %s1391_s19, %s1392_s20  }
  0x23   :  { %1384 = dma.done.wait [#allocation3], 3072  }
  0x24   :  { %1385 = vsyncadd [#allocation3], 4294964224 }
  0x25   :  { %1386 = dma.done.wait [#allocation6], 4224  }
  0x26   :  { %1387 = vsyncadd [#allocation6], 4294963072  ;;  %v1262_v0 = vld [vmem:[#allocation5] sm:$0xff]   ;;  %v1263_v1 = vld [vmem:[#allocation5 + $0x8] sm:$0xff]   ;;  %v1394_v48 = vmov 0.0   ;;  %vm1395_vm0 = vmmov 0   ;;  %v736_v54 = vlaneseq }
  0x27   :  { %1118 = vmatprep.subr.bf16.mxu0 %v1262_v0  ;;  %v1264_v2 = vld [vmem:[#allocation5 + $0x10] sm:$0xff]   ;;  %v1265_v3 = vld [vmem:[#allocation5 + $0x18] sm:$0xff]   ;;  %v1270_v4 = vld [vmem:[#allocation5 + $0x40] sm:$0xff]   ;;  %s1397_s1 = smov [#allocation7]  }
  0x28   :  { %1119 = vmatpush3.bf16.msra.mxu0 %v1262_v0  ;;  %v1271_v5 = vld [vmem:[#allocation2] sm:$0xff]   ;;  %1086 = vmatprep.subr.bf16.mxu1 %v1270_v4  ;;  %v1274_v7 = vld [vmem:[#allocation5 + $0x48] sm:$0xff]   ;;  %v1276_v8 = vld [vmem:[#allocation5 + $0x50] sm:$0xff]   ;;  %v1441_v58 = vshrl.u32 %v736_v54, 7  ;;  %s951_s6 = sshll.u32 %s1397_s1, 4  ;;  %s952_s6 = int_to_ptr.vmem [resolvable:$true] %s951_s6 }
  0x29   :  { %1120 = vmatprep.subr.bf16.mxu0 %v1263_v1  ;;  %v1266_v6 = vld [vmem:[#allocation5 + $0x20] sm:$0xff]   ;;  %1087 = vmatpush3.bf16.msra.mxu1 %v1270_v4  ;;  %v1267_v9 = vld [vmem:[#allocation5 + $0x28] sm:$0xff]   ;;  %v1280_v10 = vld [vmem:[#allocation5 + $0x58] sm:$0xff]   ;;  %s1362_s7 = scalar_lea.vmem %s952_s6, 128  ;;  %p1367_p3 = scmp.lt.s32.totalorder %s952_s6, %s952_s6 }
  0x2a   :  { %1134 = vmatprep.mubr.bf16.mxu0 %v1271_v5  ;;  %1088 = vmatprep.subr.bf16.mxu1 %v1274_v7  ;;  %v1268_v11 = vld [vmem:[#allocation5 + $0x30] sm:$0xff]   ;;  %v1282_v12 = vld [vmem:[#allocation5 + $0x60] sm:$0xff]   ;;  %v1269_v13 = vld [vmem:[#allocation5 + $0x38] sm:$0xff]   ;;  %v738_v62 = vsub.s32 0, %v1441_v58  ;;  %p1363_p2 = scmp.ne.s32.totalorder %s952_s6, %s1362_s7  ;;  %p1368_p4 = scmp.lt.s32.totalorder %s1362_s7, %s1362_s7 }
  0x2b   :  { %v1286_v14 = vld [vmem:[#allocation5 + $0x68] sm:$0xff]   ;;  %v1273_v15 = vld [vmem:[#allocation5 + $0x80] sm:$0xff]   ;;  %v1288_v16 = vld [vmem:[#allocation5 + $0x70] sm:$0xff]  }
  0x2c   :  { %1121 = vmatpush3.bf16.msra.mxu0 %v1263_v1  ;;  %v1272_v17 = vld [vmem:[#allocation2 + $0x8] sm:$0xff]   ;;  %v1277_v18 = vld [vmem:[#allocation2 + $0x10] sm:$0xff]   ;;  %v1293_v19 = vld [vmem:[#allocation2 + $0x40] sm:$0xff]   ;;  %p1369_p5 = por %p1368_p4, %p1367_p3 }
  0x2d   :  { %1122 = vmatprep.subr.bf16.mxu0 %v1264_v2  ;;  %1089 = vmatpush3.bf16.msra.mxu1 %v1274_v7  ;;  %v1275_v20 = vld [vmem:[#allocation5 + $0x88] sm:$0xff]   ;;  %v1292_v21 = vld [vmem:[#allocation5 + $0x78] sm:$0xff]   ;;  %v1279_v22 = vld [vmem:[#allocation5 + $0x90] sm:$0xff]  }
  0x2e   :  { %1090 = vmatprep.subr.bf16.mxu1 %v1276_v8  ;;  %1102 = vmatprep.mubr.bf16.mxu1 %v1293_v19  ;;  %v1278_v23 = vld [vmem:[#allocation2 + $0x18] sm:$0xff]   ;;  %v1283_v25 = vld [vmem:[#allocation2 + $0x20] sm:$0xff]   ;;  %v1295_v26 = vld [vmem:[#allocation2 + $0x48] sm:$0xff]   ;;  %p1370_p6 = pnand %p1369_p5, %p1363_p2 }
  0x2f   :  { %v1281_v24 = vld [vmem:[#allocation5 + $0x98] sm:$0xff]   ;;  %v1298_v27 = vld [vmem:[#allocation2 + $0x50] sm:$0xff]   ;;  %v1284_v28 = vld [vmem:[#allocation2 + $0x28] sm:$0xff]  }
  0x30   :  { %1123 = vmatpush3.bf16.msra.mxu0 %v1264_v2  ;;  %v1285_v29 = vld [vmem:[#allocation5 + $0xa0] sm:$0xff]   ;;  %v1289_v30 = vld [vmem:[#allocation2 + $0x30] sm:$0xff]   ;;  %v1287_v31 = vld [vmem:[#allocation5 + $0xa8] sm:$0xff]  }
  0x31   :  { %1124 = vmatprep.subr.bf16.mxu0 %v1265_v3  ;;  %1091 = vmatpush3.bf16.msra.mxu1 %v1276_v8  ;;  %v1299_v32 = vld [vmem:[#allocation2 + $0x58] sm:$0xff]   ;;  %v1302_v33 = vld [vmem:[#allocation2 + $0x60] sm:$0xff]   ;;  %v1291_v34 = vld [vmem:[#allocation5 + $0xb0] sm:$0xff]  }
  0x32   :  { %1092 = vmatprep.subr.bf16.mxu1 %v1280_v10  ;;  %v1290_v35 = vld [vmem:[#allocation2 + $0x38] sm:$0xff]   ;;  %v1296_v36 = vld [vmem:[#allocation2 + $0x80] sm:$0xff]   ;;  %v1303_v38 = vld [vmem:[#allocation2 + $0x68] sm:$0xff]  }
  0x33   :  { %v1294_v37 = vld [vmem:[#allocation5 + $0xb8] sm:$0xff]   ;;  %v1306_v39 = vld [vmem:[#allocation2 + $0x70] sm:$0xff]   ;;  %v1297_v40 = vld [vmem:[#allocation2 + $0x88] sm:$0xff]  }
  0x34   :  { %1125 = vmatpush3.bf16.msra.mxu0 %v1265_v3  ;;  %v1300_v41 = vld [vmem:[#allocation2 + $0x90] sm:$0xff]   ;;  %v1307_v42 = vld [vmem:[#allocation2 + $0x78] sm:$0xff]   ;;  %v1304_v44 = vld [vmem:[#allocation2 + $0xa0] sm:$0xff]  }
  0x35   :  { %1126 = vmatprep.subr.bf16.mxu0 %v1266_v6  ;;  %1093 = vmatpush3.bf16.msra.mxu1 %v1280_v10  ;;  %v1301_v43 = vld [vmem:[#allocation2 + $0x98] sm:$0xff]   ;;  %v1305_v45 = vld [vmem:[#allocation2 + $0xa8] sm:$0xff]   ;;  %v1308_v46 = vld [vmem:[#allocation2 + $0xb0] sm:$0xff]  }
  0x36   :  { %1094 = vmatprep.subr.bf16.mxu1 %v1282_v12  ;;  %v1309_v47 = vld [vmem:[#allocation2 + $0xb8] sm:$0xff]   ;;  %v734_v59 = vld [vmem:[#allocation5 + $0xc0] sm:$0x1] }
  0x37   :  { %v735_v61 = vunpack.c.l.bf16 %v734_v59 }
  0x38   :  { %1127 = vmatpush3.bf16.msra.mxu0 %v1266_v6 }
  0x39   :  { %1128 = vmatprep.subr.bf16.mxu0 %v1267_v9  ;;  %1095 = vmatpush3.bf16.msra.mxu1 %v1282_v12  ;;  %v1446_v2 = vrot.slane %v735_v61, %v738_v62 }
  0x3a   :  { %1096 = vmatprep.subr.bf16.mxu1 %v1286_v14 }
  0x3c   :  { %1129 = vmatpush3.bf16.msra.mxu0 %v1267_v9 }
  0x3d   :  { %1130 = vmatprep.subr.bf16.mxu0 %v1268_v11  ;;  %1097 = vmatpush3.bf16.msra.mxu1 %v1286_v14 }
  0x3e   :  { %1098 = vmatprep.subr.bf16.mxu1 %v1288_v16 }
  0x40   :  { %1131 = vmatpush3.bf16.msra.mxu0 %v1268_v11 }
  0x41   :  { %1132 = vmatprep.subr.bf16.mxu0 %v1269_v13  ;;  %1099 = vmatpush3.bf16.msra.mxu1 %v1288_v16 }
  0x42   :  { %1100 = vmatprep.subr.bf16.mxu1 %v1292_v21 }
  0x44   :  { %1133 = vmatpush3.bf16.msra.mxu0 %v1269_v13 }
  0x45   :  { %1150 = vmatprep.subr.bf16.mxu0 %v1273_v15  ;;  %1101 = vmatpush3.bf16.msra.mxu1 %v1292_v21 }
  0x46   :  { %1182 = vmatprep.subr.bf16.mxu1 %v1394_v48 }
  0x47   :  { %1135 = vmatmul.mubr.bf16.vlgmr.msra.gmra.mrb[0].mxu0 %v1272_v17 }
  0x48   :  { %1151 = vmatpush3.bf16.msra.mxu0 %v1273_v15  ;;  %1138 = vmatprep.mubr.bf16.mxu0 %v1277_v18 }
  0x49   :  { %1152 = vmatprep.subr.bf16.mxu0 %v1275_v20  ;;  %1103 = vmatmul.mubr.bf16.vlgmr.msra.gmra.mrb[0].mxu1 %v1295_v26 }
  0x4a   :  { %1106 = vmatprep.mubr.bf16.mxu1 %v1298_v27 }
  0x4c   :  { %1153 = vmatpush3.bf16.msra.mxu0 %v1275_v20 }
  0x4d   :  { %1154 = vmatprep.subr.bf16.mxu0 %v1279_v22 }
  0x4f   :  { %1139 = vmatmul.mubr.bf16.gmra.mrb[4].mxu0 %v1278_v23 }
  0x50   :  { %1155 = vmatpush3.bf16.msra.mxu0 %v1279_v22  ;;  %1142 = vmatprep.mubr.bf16.mxu0 %v1283_v25 }
  0x51   :  { %1156 = vmatprep.subr.bf16.mxu0 %v1281_v24  ;;  %1107 = vmatmul.mubr.bf16.gmra.mrb[4].mxu1 %v1299_v32 }
  0x52   :  { %1110 = vmatprep.mubr.bf16.mxu1 %v1302_v33 }
  0x54   :  { %1157 = vmatpush3.bf16.msra.mxu0 %v1281_v24 }
  0x55   :  { %1158 = vmatprep.subr.bf16.mxu0 %v1285_v29 }
  0x57   :  { %1143 = vmatmul.mubr.bf16.gmra.mrb[8].mxu0 %v1284_v28 }
  0x58   :  { %1159 = vmatpush3.bf16.msra.mxu0 %v1285_v29  ;;  %1146 = vmatprep.mubr.bf16.mxu0 %v1289_v30 }
  0x59   :  { %1160 = vmatprep.subr.bf16.mxu0 %v1287_v31  ;;  %1111 = vmatmul.mubr.bf16.gmra.mrb[8].mxu1 %v1303_v38 }
  0x5a   :  { %1114 = vmatprep.mubr.bf16.mxu1 %v1306_v39 }
  0x5c   :  { %1161 = vmatpush3.bf16.msra.mxu0 %v1287_v31 }
  0x5d   :  { %1162 = vmatprep.subr.bf16.mxu0 %v1291_v34 }
  0x5f   :  { %1147 = vmatmul.mubr.bf16.gmra.mrb[12].mxu0 %v1290_v35 }
  0x60   :  { %1163 = vmatpush3.bf16.msra.mxu0 %v1291_v34  ;;  %1166 = vmatprep.mubr.bf16.mxu0 %v1296_v36 }
  0x61   :  { %1164 = vmatprep.subr.bf16.mxu0 %v1294_v37  ;;  %1115 = vmatmul.mubr.bf16.gmra.mrb[12].mxu1 %v1307_v42 }
  0x62   :  { %1198 = vmatprep.mubr.msk.bf16.mxu1 %vm1395_vm0, %v1394_v48 }
  0x64   :  { %1165 = vmatpush3.bf16.msra.mxu0 %v1294_v37 }
  0x67   :  { %1167 = vmatmul.mubr.bf16.vlgmr.msra.gmra.mrb[0].mxu0 %v1297_v40 }
  0x68   :  { %1170 = vmatprep.mubr.bf16.mxu0 %v1300_v41 }
  0x6f   :  { %1171 = vmatmul.mubr.bf16.gmra.mrb[4].mxu0 %v1301_v43 }
  0x70   :  { %1174 = vmatprep.mubr.bf16.mxu0 %v1304_v44 }
  0x77   :  { %1175 = vmatmul.mubr.bf16.gmra.mrb[8].mxu0 %v1305_v45 }
  0x78   :  { %1178 = vmatprep.mubr.bf16.mxu0 %v1308_v46 }
  0x7f   :  { %1179 = vmatmul.mubr.bf16.gmra.mrb[12].mxu0 %v1309_v47 }
 0x11c   :  { %v1104_v49 = vpop.f32.mrb[0].mxu1 }
 0x11d   :  { %v236_v50 = vpop.f32.mrb[1].mxu1 }
 0x11e   :  { %v1105_v51 = vpop.f32.mrb[2].mxu1 }
 0x11f   :  { %v239_v52 = vpop.f32.mrb[3].mxu1 }
 0x124   :  { %v1108_v53 = vpop.f32.mrb[4].mxu1 }
 0x125   :  { %v252_v55 = vpop.f32.mrb[5].mxu1 }
 0x126   :  { %v1109_v56 = vpop.f32.mrb[6].mxu1 }
 0x127   :  { %v255_v57 = vpop.f32.mrb[7].mxu1 }
 0x12c   :  { %v1112_v60 = vpop.f32.mrb[8].mxu1 }
 0x12d   :  { %v268_v63 = vpop.f32.mrb[9].mxu1 }
 0x12e   :  { %v1113_v0 = vpop.f32.mrb[10].mxu1 }
 0x12f   :  { %v271_v1 = vpop.f32.mrb[11].mxu1 }
 0x134   :  { %v1116_v8 = vpop.f32.mrb[12].mxu1 }
 0x135   :  { %v284_v12 = vpop.f32.mrb[13].mxu1 }
 0x136   :  { %v1117_v15 = vpop.f32.mrb[14].mxu1 }
 0x137   :  { %v287_v17 = vpop.f32.mrb[15].mxu1 }
 0x13a   :  { %v1168_v3 = vpop.f32.mrb[0].mxu0 }
 0x13b   :  { %v1222_v4 = vadd.f32 %v1168_v3, %v1104_v49  ;;  %v655_v5 = vpop.f32.mrb[1].mxu0 }
 0x13c   :  { %v1223_v6 = vadd.f32 %v655_v5, %v236_v50  ;;  %v1169_v7 = vpop.f32.mrb[2].mxu0 }
 0x13d   :  { %v742_v9 = vadd.f32 %v1222_v4, %v1446_v2  ;;  %v1224_v10 = vadd.f32 %v1169_v7, %v1105_v51  ;;  %v658_v11 = vpop.f32.mrb[3].mxu0  ;;  %v778_v7 = vadd.s32 1, %v1441_v58 }
 0x13e   :  { %v740_v13 = vadd.f32 %v1223_v6, %v1446_v2  ;;  %v1225_v14 = vadd.f32 %v658_v11, %v239_v52 }
 0x13f   :  { %v743_v16 = vadd.f32 %v1224_v10, %v1446_v2  ;;  %v758_v19 = vmax.f32 %v742_v9, 0.0 }
 0x140   :  { %v741_v18 = vadd.f32 %v1225_v14, %v1446_v2  ;;  %v756_v21 = vmax.f32 %v740_v13, 0.0 }
 0x141   :  { %v759_v20 = vmax.f32 %v743_v16, 0.0 }
 0x142   :  { %v757_v22 = vmax.f32 %v741_v18, 0.0  ;;  %v1172_v23 = vpop.f32.mrb[4].mxu0  ;;  %v773_v18 = vand.u32 127, %v736_v54  ;;  %v1310_v54 = vld [vmem:[#allocation5 + $0xc4] sm:$0xff]  }
 0x143   :  { %v786_v24 = vpack.c.bf16 %v759_v20, %v758_v19  ;;  %v1226_v25 = vadd.f32 %v1172_v23, %v1108_v53  ;;  %v671_v26 = vpop.f32.mrb[5].mxu0  ;;  %v779_v19 = vmul.u32 16, %v778_v7 }
 0x144   :  { %v785_v27 = vpack.c.bf16 %v757_v22, %v756_v21  ;;  %v1227_v28 = vadd.f32 %v671_v26, %v252_v55  ;;  %v1173_v29 = vpop.f32.mrb[6].mxu0  ;;  %v1313_v26 = vld [vmem:[#allocation5 + $0xdc] sm:$0xff]  }
 0x145   :  { %v746_v30 = vadd.f32 %v1226_v25, %v1446_v2  ;;  %v1228_v31 = vadd.f32 %v1173_v29, %v1109_v56  ;;  %v674_v32 = vpop.f32.mrb[7].mxu0  ;;  %vm780_vm2 = vcmp.lt.s32.totalorder %v773_v18, %v779_v19  ;;  %v1312_v25 = vld [vmem:[#allocation5 + $0xd4] sm:$0xff]  }
 0x146   :  { %v744_v33 = vadd.f32 %v1227_v28, %v1446_v2  ;;  %v1229_v34 = vadd.f32 %v674_v32, %v255_v57  ;;  %1183 = vmatpush3.bf16.msra.mxu1 %v785_v27  ;;  %v1314_v27 = vld [vmem:[#allocation5 + $0xe4] sm:$0xff]   ;;  %v1315_v28 = vld [vmem:[#allocation5 + $0xec] sm:$0xff]   ;;  %v1316_v29 = vld [vmem:[#allocation5 + $0xf4] sm:$0xff]  }
 0x147   :  { %v747_v35 = vadd.f32 %v1228_v31, %v1446_v2  ;;  %1184 = vmatprep.subr.bf16.mxu1 %v1394_v48  ;;  %v762_v37 = vmax.f32 %v746_v30, 0.0  ;;  %v1317_v30 = vld [vmem:[#allocation5 + $0xfc] sm:$0xff]  }
 0x148   :  { %v745_v36 = vadd.f32 %v1229_v34, %v1446_v2  ;;  %v760_v39 = vmax.f32 %v744_v33, 0.0 }
 0x149   :  { %v763_v38 = vmax.f32 %v747_v35, 0.0 }
 0x14a   :  { %v761_v40 = vmax.f32 %v745_v36, 0.0  ;;  %v1176_v41 = vpop.f32.mrb[8].mxu0  ;;  %1185 = vmatpush3.bf16.msra.mxu1 %v786_v24  ;;  %v1311_v24 = vld [vmem:[#allocation5 + $0xcc] sm:$0xff]   ;;  %v850_v36 = vld [vmem:[#allocation5 + $0x104] sm:$0x1] }
 0x14b   :  { %v788_v42 = vpack.c.bf16 %v763_v38, %v762_v37  ;;  %v1230_v43 = vadd.f32 %v1176_v41, %v1112_v60  ;;  %v687_v44 = vpop.f32.mrb[9].mxu0  ;;  %1186 = vmatprep.subr.bf16.mxu1 %v1394_v48  ;;  %v851_v37 = vunpack.c.l.bf16 %v850_v36 }
 0x14c   :  { %v787_v45 = vpack.c.bf16 %v761_v40, %v760_v39  ;;  %v1231_v46 = vadd.f32 %v687_v44, %v268_v63  ;;  %v1177_v47 = vpop.f32.mrb[10].mxu0 }
 0x14d   :  { %v750_v49 = vadd.f32 %v1230_v43, %v1446_v2  ;;  %v1232_v50 = vadd.f32 %v1177_v47, %v1113_v0  ;;  %v690_v51 = vpop.f32.mrb[11].mxu0  ;;  %v855_v38 = vrot.slane %v851_v37, %v738_v62 }
 0x14e   :  { %v748_v52 = vadd.f32 %v1231_v46, %v1446_v2  ;;  %v1233_v53 = vadd.f32 %v690_v51, %v271_v1  ;;  %1187 = vmatpush3.bf16.msra.mxu1 %v787_v45 }
 0x14f   :  { %v751_v55 = vadd.f32 %v1232_v50, %v1446_v2  ;;  %1188 = vmatprep.subr.bf16.mxu1 %v1394_v48  ;;  %v766_v57 = vmax.f32 %v750_v49, 0.0 }
 0x150   :  { %v749_v56 = vadd.f32 %v1233_v53, %v1446_v2  ;;  %v764_v60 = vmax.f32 %v748_v52, 0.0 }
 0x151   :  { %v767_v59 = vmax.f32 %v751_v55, 0.0 }
 0x152   :  { %v765_v61 = vmax.f32 %v749_v56, 0.0  ;;  %v1180_v63 = vpop.f32.mrb[12].mxu0  ;;  %1189 = vmatpush3.bf16.msra.mxu1 %v788_v42 }
 0x153   :  { %v790_v3 = vpack.c.bf16 %v767_v59, %v766_v57  ;;  %v1234_v4 = vadd.f32 %v1180_v63, %v1116_v8  ;;  %v703_v0 = vpop.f32.mrb[13].mxu0  ;;  %1190 = vmatprep.subr.bf16.mxu1 %v1394_v48 }
 0x154   :  { %v789_v5 = vpack.c.bf16 %v765_v61, %v764_v60  ;;  %v1235_v1 = vadd.f32 %v703_v0, %v284_v12  ;;  %v1181_v6 = vpop.f32.mrb[14].mxu0  ;;  %v776_v12 = vmul.u32 16, %v1441_v58 }
 0x155   :  { %v754_v9 = vadd.f32 %v1234_v4, %v1446_v2  ;;  %v1236_v10 = vadd.f32 %v1181_v6, %v1117_v15  ;;  %v706_v11 = vpop.f32.mrb[15].mxu0 }
 0x156   :  { %v752_v13 = vadd.f32 %v1235_v1, %v1446_v2  ;;  %v1237_v14 = vadd.f32 %v706_v11, %v287_v17  ;;  %1191 = vmatpush3.bf16.msra.mxu1 %v789_v5  ;;  %vm777_vm1 = vcmp.ge.s32.totalorder %v773_v18, %v776_v12 }
 0x157   :  { %v755_v16 = vadd.f32 %v1236_v10, %v1446_v2  ;;  %1192 = vmatprep.subr.bf16.mxu1 %v1394_v48  ;;  %v770_v20 = vmax.f32 %v754_v9, 0.0  ;;  %vm781_vm3 = vmand %vm777_vm1, %vm780_vm2 }
 0x158   :  { %v753_v8 = vadd.f32 %v1237_v14, %v1446_v2  ;;  %v768_v22 = vmax.f32 %v752_v13, 0.0  ;;  %vm1010_vm4 = vmpackc.low %vm781_vm3, %vm781_vm3  ;;  %v1396_v2 = vmov 1.0|1.0  }
 0x159   :  { %v771_v21 = vmax.f32 %v755_v16, 0.0 }
 0x15a   :  { %v769_v15 = vmax.f32 %v753_v8, 0.0  ;;  %1193 = vmatpush3.bf16.msra.mxu1 %v790_v3 }
 0x15b   :  { %v792_v23 = vpack.c.bf16 %v771_v21, %v770_v20  ;;  %1194 = vmatprep.subr.bf16.mxu1 %v1394_v48 }
 0x15c   :  { %v791_v17 = vpack.c.bf16 %v769_v15, %v768_v22 }
 0x15e   :  { %1195 = vmatpush3.bf16.msra.mxu1 %v791_v17 }
 0x15f   :  { %1196 = vmatprep.subr.bf16.mxu1 %v1394_v48 }
 0x162   :  { %1197 = vmatpush3.bf16.msra.mxu1 %v792_v23 }
 0x163   :  { %1202 = vmatprep.subr.bf16.mxu1 %v1394_v48 }
 0x165   :  { %1199 = vmatmul.mubr.msk.bf16.vlgmr.msra.gmra.mrb[16].mxu1 %vm1010_vm4, %v1396_v2 }
 0x166   :  { %1203 = vmatpush3.bf16.msra.mxu1 %v1310_v54  ;;  %1218 = vmatprep.mubr.msk.bf16.mxu1 %vm1395_vm0, %v1394_v48 }
 0x167   :  { %1204 = vmatprep.subr.bf16.mxu1 %v1394_v48 }
 0x16a   :  { %1205 = vmatpush3.bf16.msra.mxu1 %v1311_v24 }
 0x16b   :  { %1206 = vmatprep.subr.bf16.mxu1 %v1394_v48 }
 0x16e   :  { %1207 = vmatpush3.bf16.msra.mxu1 %v1312_v25 }
 0x16f   :  { %1208 = vmatprep.subr.bf16.mxu1 %v1394_v48 }
 0x172   :  { %1209 = vmatpush3.bf16.msra.mxu1 %v1313_v26 }
 0x173   :  { %1210 = vmatprep.subr.bf16.mxu1 %v1394_v48 }
 0x176   :  { %1211 = vmatpush3.bf16.msra.mxu1 %v1314_v27 }
 0x177   :  { %1212 = vmatprep.subr.bf16.mxu1 %v1394_v48 }
 0x17a   :  { %1213 = vmatpush3.bf16.msra.mxu1 %v1315_v28 }
 0x17b   :  { %1214 = vmatprep.subr.bf16.mxu1 %v1394_v48 }
 0x17e   :  { %1215 = vmatpush3.bf16.msra.mxu1 %v1316_v29 }
 0x17f   :  { %1216 = vmatprep.subr.bf16.mxu1 %v1394_v48 }
 0x182   :  { %1217 = vmatpush3.bf16.msra.mxu1 %v1317_v30 }
 0x238   :  { %v827_v31 = vpop.f32.mrb[16].mxu1 }
 0x239   :  { %v833_v32 = vpack.c.bf16 %v827_v31, %v827_v31  ;;  %v1200_v33 = vpop.f32.mrb[17].mxu1 }
 0x23a   :  { %v830_v34 = vpop.f32.mrb[18].mxu1 }
 0x23b   :  { %v1201_v35 = vpop.f32.mrb[19].mxu1  ;;  %1219 = vmatmul.mubr.bf16.vlgmr.msra.gmra.mrb[20].mxu1 %v833_v32 }
 0x30e   :  { %v938_v39 = vpop.f32.mrb[20].mxu1 }
 0x30f   :  { %v939_v40 = vadd.f32 %v938_v39, %v855_v38  ;;  %v1220_v41 = vpop.f32.mrb[21].mxu1 }
 0x310   :  { %v941_v48 = vpop.f32.mrb[22].mxu1 }
 0x311   :  { %944 = vst [vmem:[#allocation7] sm:$0xff] %v939_v40  ;;  %v1221_v42 = vpop.f32.mrb[23].mxu1 }
 0x312   :  { %1373 = shalt.err (!%p1370_p6)
}
 0x313   :  { %s1374_s10 = scalar_lea.hbm %s1500_s2, 128 }
 0x314   :  { %p1375_p7 = scmp.ne.s32.totalorder %s1500_s2, %s1374_s10  ;;  %p1378_p8 = scmp.lt.u32.totalorder %s1374_s10, %s1500_s2 }
 0x316   :  { %p1380_p9 = pnand %p1378_p8, %p1375_p7 }
 0x318   :  { %1383 = shalt.err (!%p1380_p9)
}
 0x319   :  { %954 = dma.vmem_to_hbm [thread:$0]  %s952_s6, 128, %s1500_s2, [#allocation4]  }
 0x31a   :  { %1388 = dma.done.wait [#allocation4], 128  }
 0x31b   :  { %1389 = vsyncadd [#allocation4], 4294967168 }
 0x31c   :  { %958 = vsyncpa [#allocation3], 1 }
 0x31d   :  { %959 = vsyncpa [#allocation6], 1 }
 0x31e   :  { %960 = vsyncpa [#allocation4], 1 }

</bundles_post_ra>
